<compile_context>
chip_gen: v7x
topology: tpu7x:2x2x1
jax: 0.10.0
libtpu: 0.0.40
codegen_flags: <defaults>
</compile_context>

<pallas_src>
import jax
import jax.numpy as jnp
from jax.experimental import pallas as pl
from jax.experimental.pallas import tpu as pltpu

LANE = 128   # vreg lane width
SUB = 8      # vreg sublanes (f32)


def _round_up(x, m):
    return ((x + m - 1) // m) * m


def _make_dice_partials_kernel(row_tile, n_tiles, tail_rows):
    """Builds a kernel writing, per tile i:
       out[i] = [(8,128) partial of sum(o*t), sum(o), sum(t)]."""
    needs_mask = tail_rows != row_tile  # static: only emit mask code if needed

    def kernel(o_ref, t_ref, part_ref):
        o = o_ref[...].astype(jnp.float32)
        t = t_ref[...].astype(jnp.float32)

        if needs_mask:
            # Only the last tile is ragged; rows >= `limit` may contain
            # garbage from Pallas partial-block padding, so select
            # (NaN/Inf-safe) instead of multiplying by a 0/1 mask.
            i = pl.program_id(0)
            limit = jnp.where(i == n_tiles - 1, tail_rows, row_tile)
            rows = jax.lax.broadcasted_iota(jnp.int32, (row_tile, LANE), 0)
            keep = rows < limit
            o = jnp.where(keep, o, 0.0)
            t = jnp.where(keep, t, 0.0)

        # Layout-preserving split of the sublane axis; the axis-0 reduction is
        # vreg-wise VPU adds that hide completely under the tile DMA.
        o3 = o.reshape(row_tile // SUB, SUB, LANE)
        t3 = t.reshape(row_tile // SUB, SUB, LANE)
        part_ref[0, 0, :, :] = jnp.sum(o3 * t3, axis=0)   # intersection
        part_ref[0, 1, :, :] = jnp.sum(o3, axis=0)        # sum(outputs)
        part_ref[0, 2, :, :] = jnp.sum(t3, axis=0)        # sum(targets)

    return kernel


def dice_loss(outputs, targets, smooth=0.0, max_tile_rows=2048):
    """1 - (2*sum(o*t)+smooth) / (sum(o)+sum(t)+smooth), like the PyTorch module."""
    o = outputs.reshape(-1)          # native dtype; no wrapper-side f32 cast
    t = targets.reshape(-1)
    assert o.shape == t.shape, "outputs/targets must have equal element counts"
    n = o.shape[0]

    # (rows, 128) reshape requires n % 128 == 0; pad with zeros (neutral for
    # all three sums) only when needed.  Typical segmentation tensors are
    # already a multiple of 1024, so this is normally skipped entirely.
    n_pad = _round_up(n, SUB * LANE)
    if n_pad != n:
        o = jnp.pad(o, (0, n_pad - n))
        t = jnp.pad(t, (0, n_pad - n))
    n_rows = n_pad // LANE                       # multiple of 8

    if n_rows <= max_tile_rows:
        row_tile = n_rows                        # single block == full array
    else:
        row_tile = max_tile_rows                 # default 2048: ok for f32/bf16/i8 tiling
    n_tiles = pl.cdiv(n_rows, row_tile)
    tail_rows = n_rows - (n_tiles - 1) * row_tile  # valid rows in last tile

    o2 = o.reshape(n_rows, LANE)                 # free reshapes (contiguous)
    t2 = t.reshape(n_rows, LANE)

    partials = pl.pallas_call(
        _make_dice_partials_kernel(row_tile, n_tiles, tail_rows),
        out_shape=jax.ShapeDtypeStruct((n_tiles, 3, SUB, LANE), jnp.float32),
        grid_spec=pltpu.PrefetchScalarGridSpec(
            num_scalar_prefetch=0,
            grid=(n_tiles,),
            in_specs=[
                pl.BlockSpec((row_tile, LANE), lambda i: (i, 0)),   # outputs
                pl.BlockSpec((row_tile, LANE), lambda i: (i, 0)),   # targets
            ],
            out_specs=pl.BlockSpec((1, 3, SUB, LANE), lambda i: (i, 0, 0, 0)),
        ),
        compiler_params=pltpu.CompilerParams(
            # Per-tile partials are fully independent: safe to shard across
            # TensorCores on multi-core chips (v7x), sequential on v5e/v6e.
            dimension_semantics=("parallel",),
            # Explicit, modest budget: ~4 MiB double-buffered inputs at the
            # default tile; 32 MiB fits v5e/v6e (128 MiB) and v7x (64 MiB).
            vmem_limit_bytes=32 * 1024 * 1024,
        ),
    )(o2, t2)

    # Tiny epilogue (a few KiB): combine vreg partials into the scalar loss.
    inter = jnp.sum(partials[:, 0])
    sum_o = jnp.sum(partials[:, 1])
    sum_t = jnp.sum(partials[:, 2])
    dice = (2.0 * inter + smooth) / (sum_o + sum_t + smooth)
    return 1.0 - dice


def dice_loss_ref(outputs, targets, smooth=0.0):
    o = outputs.reshape(-1).astype(jnp.float32)
    t = targets.reshape(-1).astype(jnp.float32)
    inter = jnp.sum(o * t)
    return 1.0 - (2.0 * inter + smooth) / (jnp.sum(o) + jnp.sum(t) + smooth)


if __name__ == "__main__":
    key = jax.random.PRNGKey(0)
    k1, k2, k3, k4 = jax.random.split(key, 4)

    # NCHW probabilities + binary targets, as a segmentation head would produce.
    outputs = jax.nn.sigmoid(jax.random.normal(k1, (2, 4, 16, 16), jnp.float32))
    targets = (jax.random.uniform(k2, (2, 4, 16, 16)) > 0.5).astype(jnp.float32)

    loss = jax.block_until_ready(dice_loss(outputs, targets, smooth=0.0))
    ref = dice_loss_ref(outputs, targets, smooth=0.0)
    assert jnp.allclose(loss, ref, atol=1e-5, rtol=1e-5), (loss, ref)

    # Also exercise the multi-tile + ragged-tail (masked) path with a tiny tile.
    outputs2 = jax.nn.sigmoid(jax.random.normal(k3, (2, 5, 16, 16), jnp.float32))
    targets2 = (jax.random.uniform(k4, (2, 5, 16, 16)) > 0.5).astype(jnp.float32)
    loss2 = jax.block_until_ready(
        dice_loss(outputs2, targets2, smooth=1.0, max_tile_rows=16))
    ref2 = dice_loss_ref(outputs2, targets2, smooth=1.0)
    assert jnp.allclose(loss2, ref2, atol=1e-5, rtol=1e-5), (loss2, ref2)

    print("KERNEL_OK")
</pallas_src>

<mosaic_0001>
module attributes {stable_mosaic.version = 11 : i64} {
  func.func @kernel(%arg0: i32, %arg1: memref<16x128xf32, #tpu.memory_space<vmem>>, %arg2: memref<16x128xf32, #tpu.memory_space<vmem>>, %arg3: memref<1x3x8x128xf32, #tpu.memory_space<vmem>>) attributes {dimension_semantics = [#tpu.dimension_semantics<parallel>], iteration_bounds = array<i64: 1>, scalar_prefetch = 0 : i64, scratch_operands = 0 : i64, tpu.core_type = #tpu.core_type<tc>, window_params = [{transform_indices = @transform_0, window_bounds = array<i64: 16, 128>}, {transform_indices = @transform_1, window_bounds = array<i64: 16, 128>}, {transform_indices = @transform_2, window_bounds = array<i64: 1, 3, 8, 128>}]} {
    %c0 = arith.constant 0 : index
    %c0_0 = arith.constant 0 : index
    %0 = vector.load %arg1[%c0, %c0_0] : memref<16x128xf32, #tpu.memory_space<vmem>>, vector<16x128xf32>
    %c0_1 = arith.constant 0 : index
    %c0_2 = arith.constant 0 : index
    %1 = vector.load %arg2[%c0_1, %c0_2] : memref<16x128xf32, #tpu.memory_space<vmem>>, vector<16x128xf32>
    %2 = vector.shape_cast %0 : vector<16x128xf32> to vector<2x8x128xf32>
    %3 = vector.shape_cast %1 : vector<16x128xf32> to vector<2x8x128xf32>
    %4 = arith.mulf %2, %3 : vector<2x8x128xf32>
    %cst = arith.constant dense<0.000000e+00> : vector<8x128xf32>
    %5 = vector.multi_reduction <add>, %4, %cst [0] : vector<2x8x128xf32> to vector<8x128xf32>
    %c0_3 = arith.constant 0 : index
    %c0_4 = arith.constant 0 : index
    %c0_5 = arith.constant 0 : index
    %c0_6 = arith.constant 0 : index
    %6 = vector.load %arg3[%c0_3, %c0_4, %c0_5, %c0_6] : memref<1x3x8x128xf32, #tpu.memory_space<vmem>>, vector<1x1x8x128xf32>
    %7 = vector.shape_cast %6 : vector<1x1x8x128xf32> to vector<8x128xf32>
    %8 = vector.shape_cast %5 : vector<8x128xf32> to vector<1x1x8x128xf32>
    tpu.vector_store %arg3[%c0_3, %c0_4, %c0_5, %c0_6], %8 {strides = array<i32>} : memref<1x3x8x128xf32, #tpu.memory_space<vmem>>, vector<1x1x8x128xf32>,
    %cst_7 = arith.constant dense<0.000000e+00> : vector<8x128xf32>
    %9 = vector.multi_reduction <add>, %2, %cst_7 [0] : vector<2x8x128xf32> to vector<8x128xf32>
    %c0_8 = arith.constant 0 : index
    %c1 = arith.constant 1 : index
    %c0_9 = arith.constant 0 : index
    %c0_10 = arith.constant 0 : index
    %10 = vector.load %arg3[%c0_8, %c1, %c0_9, %c0_10] : memref<1x3x8x128xf32, #tpu.memory_space<vmem>>, vector<1x1x8x128xf32>
    %11 = vector.shape_cast %10 : vector<1x1x8x128xf32> to vector<8x128xf32>
    %12 = vector.shape_cast %9 : vector<8x128xf32> to vector<1x1x8x128xf32>
    tpu.vector_store %arg3[%c0_8, %c1, %c0_9, %c0_10], %12 {strides = array<i32>} : memref<1x3x8x128xf32, #tpu.memory_space<vmem>>, vector<1x1x8x128xf32>,
    %cst_11 = arith.constant dense<0.000000e+00> : vector<8x128xf32>
    %13 = vector.multi_reduction <add>, %3, %cst_11 [0] : vector<2x8x128xf32> to vector<8x128xf32>
    %c0_12 = arith.constant 0 : index
    %c2 = arith.constant 2 : index
    %c0_13 = arith.constant 0 : index
    %c0_14 = arith.constant 0 : index
    %14 = vector.load %arg3[%c0_12, %c2, %c0_13, %c0_14] : memref<1x3x8x128xf32, #tpu.memory_space<vmem>>, vector<1x1x8x128xf32>
    %15 = vector.shape_cast %14 : vector<1x1x8x128xf32> to vector<8x128xf32>
    %16 = vector.shape_cast %13 : vector<8x128xf32> to vector<1x1x8x128xf32>
    tpu.vector_store %arg3[%c0_12, %c2, %c0_13, %c0_14], %16 {strides = array<i32>} : memref<1x3x8x128xf32, #tpu.memory_space<vmem>>, vector<1x1x8x128xf32>,
    return
  }
  func.func @transform_0(%arg0: i32) -> (i32, i32) {
    %c0_i32 = arith.constant 0 : i32
    %c0_i32_0 = arith.constant 0 : i32
    return %arg0, %c0_i32 : i32, i32
  }
  func.func @transform_1(%arg0: i32) -> (i32, i32) {
    %c0_i32 = arith.constant 0 : i32
    %c0_i32_0 = arith.constant 0 : i32
    return %arg0, %c0_i32 : i32, i32
  }
  func.func @transform_2(%arg0: i32) -> (i32, i32, i32, i32) {
    %c0_i32 = arith.constant 0 : i32
    %c0_i32_0 = arith.constant 0 : i32
    %c0_i32_1 = arith.constant 0 : i32
    %c0_i32_2 = arith.constant 0 : i32
    return %arg0, %c0_i32, %c0_i32_0, %c0_i32_1 : i32, i32, i32, i32
  }
}

</mosaic_0001>

<bundles_post_ra>
// kernel: tpu_custom_call.1
= control target key start
LH: loop header
LB: loop body
LE: loop exit
PB: predicated region body
PF: predicated region fallthrough
CT: control target
= control target key end

     0   :  { %7 = vsyncpa [#allocation3], 0  ;;  %s214_s0 = inlined_call_operand.hbm [shape: f32[16,128], index: 0, kind: input, shape index: {}]   ;;  %s215_s1 = inlined_call_operand.hbm [shape: f32[16,128], index: 1, kind: input, shape index: {}]   ;;  %s216_s2 = inlined_call_operand.hbm [shape: f32[1,3,8,128], index: 2, kind: output, shape index: {}]  }
   0x1   :  { %8 = vsyncpa [#allocation6], 0 }
   0x2   :  { %9 = vsyncpa [#allocation4], 0  ;;  %s149_s9 = smov [#allocation2]   ;;  %s77_s13 = scalar_lea.hbm %s214_s0, 256 }
   0x3   :  { %s15_s10 = sshll.u32 %s149_s9, 4  ;;  %p78_p0 = scmp.ne.s32.totalorder %s214_s0, %s77_s13  ;;  %s16_s10 = int_to_ptr.vmem [resolvable:$true] %s15_s10 }
   0x4   :  { %p81_p1 = scmp.lt.u32.totalorder %s77_s13, %s214_s0 }
   0x6   :  { %p83_p2 = pnand %p81_p1, %p78_p0 }
   0x8   :  { %86 = shalt.err (!%p83_p2)
}
   0x9   :  { %s87_s18 = scalar_lea.vmem %s16_s10, 256  ;;  %p92_p4 = scmp.lt.s32.totalorder %s16_s10, %s16_s10 }
   0xa   :  { %p88_p3 = scmp.ne.s32.totalorder %s16_s10, %s87_s18  ;;  %p93_p5 = scmp.lt.s32.totalorder %s87_s18, %s87_s18 }
   0xc   :  { %p94_p6 = por %p93_p5, %p92_p4 }
   0xe   :  { %p95_p7 = pnand %p94_p6, %p88_p3 }
  0x10   :  { %98 = shalt.err (!%p95_p7)
}
  0x11   :  { %s150_s19 = smov 128   ;;  %s151_s20 = smov 8  }
  0x12   :  { %21 = dma.hbm_to_vmem [thread:$0]  %s214_s0, 256, %s16_s10, [#allocation3], %s150_s19, %s150_s19, %s151_s20  }
  0x13   :  { %s152_s23 = smov [#allocation5]   ;;  %s99_s27 = scalar_lea.hbm %s215_s1, 256 }
  0x14   :  { %s27_s24 = sshll.u32 %s152_s23, 4  ;;  %p100_p8 = scmp.ne.s32.totalorder %s215_s1, %s99_s27  ;;  %s28_s24 = int_to_ptr.vmem [resolvable:$true] %s27_s24 }
  0x15   :  { %p103_p9 = scmp.lt.u32.totalorder %s99_s27, %s215_s1 }
  0x17   :  { %p105_p10 = pnand %p103_p9, %p100_p8 }
  0x19   :  { %108 = shalt.err (!%p105_p10)
}
  0x1a   :  { %s109_s4 = scalar_lea.vmem %s28_s24, 256  ;;  %p114_p12 = scmp.lt.s32.totalorder %s28_s24, %s28_s24 }
  0x1b   :  { %p110_p11 = scmp.ne.s32.totalorder %s28_s24, %s109_s4  ;;  %p115_p13 = scmp.lt.s32.totalorder %s109_s4, %s109_s4 }
  0x1d   :  { %p116_p0 = por %p115_p13, %p114_p12 }
  0x1f   :  { %p117_p1 = pnand %p116_p0, %p110_p11 }
  0x21   :  { %120 = shalt.err (!%p117_p1)
}
  0x22   :  { %33 = dma.hbm_to_vmem [thread:$0]  %s215_s1, 256, %s28_s24, [#allocation6], %s150_s19, %s150_s19, %s151_s20  }
  0x23   :  { %143 = dma.done.wait [#allocation3], 256  }
  0x24   :  { %144 = vsyncadd [#allocation3], 4294967040 }
  0x25   :  { %145 = dma.done.wait [#allocation6], 256  }
  0x26   :  { %146 = vsyncadd [#allocation6], 4294967040  ;;  %v40_v0 = vld [vmem:[#allocation2] sm:$0xff]  ;;  %v41_v1 = vld [vmem:[#allocation2 + $0x8] sm:$0xff]  ;;  %s153_s6 = smov [#allocation7]  }
  0x27   :  { %v42_v2 = vld [vmem:[#allocation5] sm:$0xff]  ;;  %v43_v3 = vld [vmem:[#allocation5 + $0x8] sm:$0xff]  ;;  %v48_v5 = vadd.f32 %v41_v1, %v40_v0  ;;  %s59_s7 = sshll.u32 %s153_s6, 4  ;;  %s60_s7 = int_to_ptr.vmem [resolvable:$true] %s59_s7 }
  0x28   :  { %v44_v4 = vmul.f32 %v42_v2, %v40_v0  ;;  %v45_v6 = vmul.f32 %v43_v3, %v41_v1  ;;  %v51_v7 = vadd.f32 %v43_v3, %v42_v2  ;;  %s121_s1 = scalar_lea.vmem %s60_s7, 384  ;;  %p126_p3 = scmp.lt.s32.totalorder %s60_s7, %s60_s7 }
  0x29   :  { %50 = vst [vmem:[#allocation7 + $0x8] sm:$0xff] %v48_v5  ;;  %p122_p2 = scmp.ne.s32.totalorder %s60_s7, %s121_s1  ;;  %p127_p4 = scmp.lt.s32.totalorder %s121_s1, %s121_s1 }
  0x2a   :  { %v46_v8 = vadd.f32 %v45_v6, %v44_v4  ;;  %53 = vst [vmem:[#allocation7 + $0x10] sm:$0xff] %v51_v7 }
  0x2b   :  { %p128_p5 = por %p127_p4, %p126_p3 }
  0x2c   :  { %47 = vst [vmem:[#allocation7] sm:$0xff] %v46_v8 }
  0x2d   :  { %p129_p6 = pnand %p128_p5, %p122_p2 }
  0x2f   :  { %132 = shalt.err (!%p129_p6)
}
  0x30   :  { %s133_s10 = scalar_lea.hbm %s216_s2, 384 }
  0x31   :  { %p134_p7 = scmp.ne.s32.totalorder %s216_s2, %s133_s10  ;;  %p137_p8 = scmp.lt.u32.totalorder %s133_s10, %s216_s2 }
  0x33   :  { %p139_p9 = pnand %p137_p8, %p134_p7 }
  0x35   :  { %142 = shalt.err (!%p139_p9)
}
  0x36   :  { %65 = dma.vmem_to_hbm [thread:$0]  %s60_s7, 384, %s216_s2, [#allocation4], %s150_s19, %s150_s19, %s151_s20  }
  0x37   :  { %147 = dma.done.wait [#allocation4], 384  }
  0x38   :  { %148 = vsyncadd [#allocation4], 4294966912 }
  0x39   :  { %69 = vsyncpa [#allocation3], 1 }
  0x3a   :  { %70 = vsyncpa [#allocation6], 1 }
  0x3b   :  { %71 = vsyncpa [#allocation4], 1 }

</bundles_post_ra>
